<compile_context>
chip_gen: v6e
topology: v6e:2x2x1
jax: 0.10.0
libtpu: 0.0.40
codegen_flags: <defaults>
</compile_context>

<pallas_src>
import functools

import jax
import jax.numpy as jnp
from jax import lax
from jax.experimental import pallas as pl
from jax.experimental.pallas import tpu as pltpu

LN_EPS = 1e-5


def _round_up(x, m):
    return (x + m - 1) // m * m


def _layernorm(h, gamma, beta, true_dim):
    """PyTorch-style LayerNorm over the last dim.

    Supports a lane-padded feature dim: columns >= true_dim are assumed to be
    exactly zero on input; they are excluded from mean/var (divide by the true
    feature count) and stay zero on output (gamma/beta pads are zero).
    """
    padded_dim = h.shape[-1]
    if padded_dim == true_dim:
        mean = jnp.mean(h, axis=-1, keepdims=True)
        centered = h - mean
        var = jnp.mean(centered * centered, axis=-1, keepdims=True)
    else:
        mask = lax.broadcasted_iota(jnp.int32, h.shape, h.ndim - 1) < true_dim
        inv_n = 1.0 / float(true_dim)
        hm = jnp.where(mask, h, 0.0)
        mean = jnp.sum(hm, axis=-1, keepdims=True) * inv_n
        centered = jnp.where(mask, hm - mean, 0.0)
        var = jnp.sum(centered * centered, axis=-1, keepdims=True) * inv_n
    return centered * lax.rsqrt(var + LN_EPS) * gamma + beta


def classifier_kernel(x_ref,
                      w1_ref, b1_ref, g1_ref, be1_ref,
                      w2_ref, b2_ref, g2_ref, be2_ref,
                      w3_ref, b3_ref,
                      out_ref, *, hidden, hidden2):
    # x tile arrives f32 straight from HBM; cast to bf16 here (no wrapper-side pass).
    x = x_ref[...].astype(jnp.bfloat16)

    # fc -> relu -> layernorm   (bf16 MXU matmul, f32 accumulation + elementwise)
    h = jnp.dot(x, w1_ref[...], preferred_element_type=jnp.float32) + b1_ref[...]
    h = jnp.maximum(h, 0.0)
    h = _layernorm(h, g1_ref[...], be1_ref[...], hidden)

    # fc2 -> relu -> layernorm2
    h = jnp.dot(h.astype(jnp.bfloat16), w2_ref[...],
                preferred_element_type=jnp.float32) + b2_ref[...]
    h = jnp.maximum(h, 0.0)
    h = _layernorm(h, g2_ref[...], be2_ref[...], hidden2)

    # fc3 (class dim lane-padded to 128 -> unmasked lane-dense store)
    out = jnp.dot(h.astype(jnp.bfloat16), w3_ref[...],
                  preferred_element_type=jnp.float32) + b3_ref[...]
    out_ref[...] = out.astype(out_ref.dtype)


def prepare_params(params):
    """One-time weight prep, hoisted out of the per-call forward.

    bf16-casts the matmul weights and zero-pads the hidden / class dims to
    128-lane multiples (padding is exact zeros, so results are unchanged).
    """
    F, H = params["w1"].shape
    H2 = params["w2"].shape[1]
    C = params["w3"].shape[1]
    Hp, H2p, Cp = _round_up(H, 128), _round_up(H2, 128), _round_up(C, 128)

    def pad2(a, rows, cols, dtype=None):
        a = jnp.pad(a, ((0, rows - a.shape[0]), (0, cols - a.shape[1])))
        return a if dtype is None else a.astype(dtype)

    prepped = {
        "w1": pad2(params["w1"], F, Hp, jnp.bfloat16),
        "b1": pad2(params["b1"], 1, Hp),
        "g1": pad2(params["g1"], 1, Hp),
        "be1": pad2(params["be1"], 1, Hp),
        "w2": pad2(params["w2"], Hp, H2p, jnp.bfloat16),
        "b2": pad2(params["b2"], 1, H2p),
        "g2": pad2(params["g2"], 1, H2p),
        "be2": pad2(params["be2"], 1, H2p),
        "w3": pad2(params["w3"], H2p, Cp, jnp.bfloat16),
        "b3": pad2(params["b3"], 1, Cp),
    }
    dims = {"in_features": F, "hidden": H, "hidden2": H2, "num_class": C,
            "hidden_p": Hp, "hidden2_p": H2p, "num_class_p": Cp}
    return prepped, dims


def classifier_forward(x, prepped, dims, *, max_batch_tile=256,
                       vmem_budget_bytes=40 * 1024 * 1024):
    """x: (B, num_node, dim) float32.  prepped/dims: output of prepare_params."""
    B = x.shape[0]
    x2d = x.reshape(B, -1)                               # x.view(x.shape[0], -1)
    if x2d.dtype != jnp.float32:
        x2d = x2d.astype(jnp.float32)
    F = x2d.shape[1]
    assert F == dims["in_features"]
    H, H2, C = dims["hidden"], dims["hidden2"], dims["num_class"]
    Hp, H2p, Cp = dims["hidden_p"], dims["hidden2_p"], dims["num_class_p"]

    # ---- batch tile: multiple of 16, capped for MXU fill, sized to a VMEM budget ----
    TB = min(max_batch_tile, _round_up(B, 16))

    def vmem_bytes(tb):
        weights = 2 * (F * Hp + Hp * H2p + H2p * Cp)      # bf16, single-buffered (Buffered(1))
        small = 4 * (3 * Hp + 3 * H2p + Cp)               # f32 biases / LN params
        x_bufs = 2 * tb * F * 4                           # double-buffered f32 x tiles
        o_bufs = 2 * tb * Cp * 4                          # double-buffered f32 out tiles
        interm = 3 * tb * max(F, Hp, H2p) * 4             # working-set headroom
        return weights + small + x_bufs + o_bufs + interm

    while TB > 16 and vmem_bytes(TB) > vmem_budget_bytes:
        TB = max(16, _round_up(TB // 2, 16))

    # v7x megacore: keep >= 2 grid steps when the batch allows, so both TCs get work.
    if B > 16 and _round_up(B, TB) // TB < 2:
        TB = _round_up(pl.cdiv(B, 2), 16)

    Bp = _round_up(B, TB)
    if Bp != B:
        x2d = jnp.pad(x2d, ((0, Bp - B), (0, 0)))
    grid = (Bp // TB,)

    batch_map = lambda i: (i, 0)
    const_map = lambda i: (0, 0)

    def resident(arr):
        # Whole array VMEM-resident across the grid; constant index_map so a single
        # buffer suffices (no pointless double-buffering of weights).
        return pl.BlockSpec(arr.shape, const_map, pipeline_mode=pl.Buffered(1))

    weight_args = (
        prepped["w1"], prepped["b1"], prepped["g1"], prepped["be1"],
        prepped["w2"], prepped["b2"], prepped["g2"], prepped["be2"],
        prepped["w3"], prepped["b3"],
    )
    in_specs = [pl.BlockSpec((TB, F), batch_map)] + [resident(a) for a in weight_args]

    kernel = functools.partial(classifier_kernel, hidden=H, hidden2=H2)

    out = pl.pallas_call(
        kernel,
        out_shape=jax.ShapeDtypeStruct((Bp, Cp), jnp.float32),
        grid=grid,
        in_specs=in_specs,
        out_specs=pl.BlockSpec((TB, Cp), batch_map),
        compiler_params=pltpu.CompilerParams(
            dimension_semantics=("parallel",),
            vmem_limit_bytes=48 * 1024 * 1024,
        ),
    )(x2d, *weight_args)

    return out[:B, :C]


def init_params(key, num_node, dim, hidden_dim, num_class):
    """Deterministic synthetic parameters with the shapes implied by __init__."""
    in_features = num_node * dim
    h2 = hidden_dim // 2
    ks = jax.random.split(key, 6)

    def lin(kw, kb, fan_in, fan_out):
        bound = 1.0 / jnp.sqrt(fan_in)
        w = jax.random.uniform(kw, (fan_in, fan_out), jnp.float32, -bound, bound)
        b = jax.random.uniform(kb, (1, fan_out), jnp.float32, -bound, bound)
        return w, b

    w1, b1 = lin(ks[0], ks[1], in_features, hidden_dim)
    w2, b2 = lin(ks[2], ks[3], hidden_dim, h2)
    w3, b3 = lin(ks[4], ks[5], h2, num_class)

    return {
        "w1": w1, "b1": b1,
        "g1": jnp.ones((1, hidden_dim), jnp.float32),
        "be1": jnp.zeros((1, hidden_dim), jnp.float32),
        "w2": w2, "b2": b2,
        "g2": jnp.ones((1, h2), jnp.float32),
        "be2": jnp.zeros((1, h2), jnp.float32),
        "w3": w3, "b3": b3,
    }


def reference_forward(x, params):
    """Pure-JAX reference mirroring the kernel's bf16-matmul / f32-elementwise numerics."""
    bf = lambda a: a.astype(jnp.bfloat16).astype(jnp.float32)
    h = bf(x.reshape(x.shape[0], -1))
    h = jnp.maximum(h @ bf(params["w1"]) + params["b1"], 0.0)
    h = _layernorm(h, params["g1"], params["be1"], h.shape[-1])
    h = jnp.maximum(bf(h) @ bf(params["w2"]) + params["b2"], 0.0)
    h = _layernorm(h, params["g2"], params["be2"], h.shape[-1])
    return bf(h) @ bf(params["w3"]) + params["b3"]


if __name__ == "__main__":
    # Small shapes: num_node=8, dim=4 -> in_features=32, hidden_dim=32, num_class=2
    B, num_node, dim, hidden_dim, num_class = 2, 8, 4, 32, 2

    key = jax.random.PRNGKey(0)
    kx, kp = jax.random.split(key)
    x = jax.random.normal(kx, (B, num_node, dim), jnp.float32)
    params = init_params(kp, num_node, dim, hidden_dim, num_class)

    prepped, dims = prepare_params(params)     # one-time weight prep (hoisted out of forward)

    out = classifier_forward(x, prepped, dims)
    out = jax.block_until_ready(out)

    ref = reference_forward(x, params)
    assert out.shape == (B, num_class)
    assert jnp.allclose(out, ref, atol=1e-3, rtol=1e-3), "mismatch vs reference"

    print("KERNEL_OK")
</pallas_src>

<mosaic_0001>
module attributes {stable_mosaic.version = 11 : i64} {
  func.func @classifier_kernel(%arg0: i32, %arg1: memref<16x32xf32, #tpu.memory_space<vmem>>, %arg2: memref<32x128xbf16, #tpu.memory_space<vmem>>, %arg3: memref<1x128xf32, #tpu.memory_space<vmem>>, %arg4: memref<1x128xf32, #tpu.memory_space<vmem>>, %arg5: memref<1x128xf32, #tpu.memory_space<vmem>>, %arg6: memref<128x128xbf16, #tpu.memory_space<vmem>>, %arg7: memref<1x128xf32, #tpu.memory_space<vmem>>, %arg8: memref<1x128xf32, #tpu.memory_space<vmem>>, %arg9: memref<1x128xf32, #tpu.memory_space<vmem>>, %arg10: memref<128x128xbf16, #tpu.memory_space<vmem>>, %arg11: memref<1x128xf32, #tpu.memory_space<vmem>>, %arg12: memref<16x128xf32, #tpu.memory_space<vmem>>) attributes {dimension_semantics = [#tpu.dimension_semantics<parallel>], iteration_bounds = array<i64: 1>, scalar_prefetch = 0 : i64, scratch_operands = 0 : i64, tpu.core_type = #tpu.core_type<tc>, window_params = [{transform_indices = @transform_0, window_bounds = array<i64: 16, 32>}, {pipeline_mode = #tpu.pipeline_mode<synchronous>, transform_indices = @transform_1, window_bounds = array<i64: 32, 128>}, {pipeline_mode = #tpu.pipeline_mode<synchronous>, transform_indices = @transform_2, window_bounds = array<i64: 1, 128>}, {pipeline_mode = #tpu.pipeline_mode<synchronous>, transform_indices = @transform_3, window_bounds = array<i64: 1, 128>}, {pipeline_mode = #tpu.pipeline_mode<synchronous>, transform_indices = @transform_4, window_bounds = array<i64: 1, 128>}, {pipeline_mode = #tpu.pipeline_mode<synchronous>, transform_indices = @transform_5, window_bounds = array<i64: 128, 128>}, {pipeline_mode = #tpu.pipeline_mode<synchronous>, transform_indices = @transform_6, window_bounds = array<i64: 1, 128>}, {pipeline_mode = #tpu.pipeline_mode<synchronous>, transform_indices = @transform_7, window_bounds = array<i64: 1, 128>}, {pipeline_mode = #tpu.pipeline_mode<synchronous>, transform_indices = @transform_8, window_bounds = array<i64: 1, 128>}, {pipeline_mode = #tpu.pipeline_mode<synchronous>, transform_indices = @transform_9, window_bounds = array<i64: 128, 128>}, {pipeline_mode = #tpu.pipeline_mode<synchronous>, transform_indices = @transform_10, window_bounds = array<i64: 1, 128>}, {transform_indices = @transform_11, window_bounds = array<i64: 16, 128>}]} {
    %c0 = arith.constant 0 : index
    %c0_0 = arith.constant 0 : index
    %0 = vector.load %arg1[%c0, %c0_0] : memref<16x32xf32, #tpu.memory_space<vmem>>, vector<16x32xf32>
    %1 = arith.truncf %0 : vector<16x32xf32> to vector<16x32xbf16>
    %c0_1 = arith.constant 0 : index
    %c0_2 = arith.constant 0 : index
    %2 = vector.load %arg2[%c0_1, %c0_2] : memref<32x128xbf16, #tpu.memory_space<vmem>>, vector<32x128xbf16>
    %cst = arith.constant dense<0.000000e+00> : vector<16x128xf32>
    %3 = tpu.matmul %1, %2, %cst {dimension_numbers = #tpu.dot_dimension_numbers<[1], [0], [0], [1], [0, 0, 1, 1], [], []>} : vector<16x32xbf16>, vector<32x128xbf16>, vector<16x128xf32> -> vector<16x128xf32>
    %c0_3 = arith.constant 0 : index
    %c0_4 = arith.constant 0 : index
    %4 = vector.load %arg3[%c0_3, %c0_4] : memref<1x128xf32, #tpu.memory_space<vmem>>, vector<1x128xf32>
    %5 = vector.broadcast %4 : vector<1x128xf32> to vector<16x128xf32>
    %6 = arith.addf %3, %5 : vector<16x128xf32>
    %cst_5 = arith.constant 0.000000e+00 : f32
    %7 = vector.broadcast %cst_5 : f32 to vector<16x128xf32>
    %8 = arith.maximumf %6, %7 : vector<16x128xf32>
    %c0_6 = arith.constant 0 : index
    %c0_7 = arith.constant 0 : index
    %9 = vector.load %arg4[%c0_6, %c0_7] : memref<1x128xf32, #tpu.memory_space<vmem>>, vector<1x128xf32>
    %c0_8 = arith.constant 0 : index
    %c0_9 = arith.constant 0 : index
    %10 = vector.load %arg5[%c0_8, %c0_9] : memref<1x128xf32, #tpu.memory_space<vmem>>, vector<1x128xf32>
    %11 = tpu.iota {dimensions = array<i32: 1>} : vector<16x128xi32>
    %c32_i32 = arith.constant 32 : i32
    %12 = vector.broadcast %c32_i32 : i32 to vector<16x128xi32>
    %13 = arith.cmpi slt, %11, %12 : vector<16x128xi32>
    %cst_10 = arith.constant 0.000000e+00 : f32
    %14 = vector.broadcast %cst_10 : f32 to vector<16x128xf32>
    %15 = arith.select %13, %8, %14 : vector<16x128xi1>, vector<16x128xf32>
    %cst_11 = arith.constant dense<0.000000e+00> : vector<16xf32>
    %16 = vector.multi_reduction <add>, %15, %cst_11 [1] : vector<16x128xf32> to vector<16xf32>
    %17 = vector.shape_cast %16 : vector<16xf32> to vector<16x1xf32>
    %cst_12 = arith.constant 3.125000e-02 : f32
    %18 = vector.broadcast %cst_12 : f32 to vector<16x1xf32>
    %19 = arith.mulf %17, %18 : vector<16x1xf32>
    %20 = vector.broadcast %19 : vector<16x1xf32> to vector<16x128xf32>
    %21 = arith.subf %15, %20 : vector<16x128xf32>
    %cst_13 = arith.constant 0.000000e+00 : f32
    %22 = vector.broadcast %cst_13 : f32 to vector<16x128xf32>
    %23 = arith.select %13, %21, %22 : vector<16x128xi1>, vector<16x128xf32>
    %24 = arith.mulf %23, %23 : vector<16x128xf32>
    %cst_14 = arith.constant dense<0.000000e+00> : vector<16xf32>
    %25 = vector.multi_reduction <add>, %24, %cst_14 [1] : vector<16x128xf32> to vector<16xf32>
    %26 = vector.shape_cast %25 : vector<16xf32> to vector<16x1xf32>
    %cst_15 = arith.constant 3.125000e-02 : f32
    %27 = vector.broadcast %cst_15 : f32 to vector<16x1xf32>
    %28 = arith.mulf %26, %27 : vector<16x1xf32>
    %cst_16 = arith.constant 9.99999974E-6 : f32
    %29 = vector.broadcast %cst_16 : f32 to vector<16x1xf32>
    %30 = arith.addf %28, %29 : vector<16x1xf32>
    %31 = math.rsqrt %30 : vector<16x1xf32>
    %32 = vector.broadcast %31 : vector<16x1xf32> to vector<16x128xf32>
    %33 = arith.mulf %23, %32 : vector<16x128xf32>
    %34 = vector.broadcast %9 : vector<1x128xf32> to vector<16x128xf32>
    %35 = arith.mulf %33, %34 : vector<16x128xf32>
    %36 = vector.broadcast %10 : vector<1x128xf32> to vector<16x128xf32>
    %37 = arith.addf %35, %36 : vector<16x128xf32>
    %38 = arith.truncf %37 : vector<16x128xf32> to vector<16x128xbf16>
    %c0_17 = arith.constant 0 : index
    %c0_18 = arith.constant 0 : index
    %39 = vector.load %arg6[%c0_17, %c0_18] : memref<128x128xbf16, #tpu.memory_space<vmem>>, vector<128x128xbf16>
    %cst_19 = arith.constant dense<0.000000e+00> : vector<16x128xf32>
    %40 = tpu.matmul %38, %39, %cst_19 {dimension_numbers = #tpu.dot_dimension_numbers<[1], [0], [0], [1], [0, 0, 1, 1], [], []>} : vector<16x128xbf16>, vector<128x128xbf16>, vector<16x128xf32> -> vector<16x128xf32>
    %c0_20 = arith.constant 0 : index
    %c0_21 = arith.constant 0 : index
    %41 = vector.load %arg7[%c0_20, %c0_21] : memref<1x128xf32, #tpu.memory_space<vmem>>, vector<1x128xf32>
    %42 = vector.broadcast %41 : vector<1x128xf32> to vector<16x128xf32>
    %43 = arith.addf %40, %42 : vector<16x128xf32>
    %cst_22 = arith.constant 0.000000e+00 : f32
    %44 = vector.broadcast %cst_22 : f32 to vector<16x128xf32>
    %45 = arith.maximumf %43, %44 : vector<16x128xf32>
    %c0_23 = arith.constant 0 : index
    %c0_24 = arith.constant 0 : index
    %46 = vector.load %arg8[%c0_23, %c0_24] : memref<1x128xf32, #tpu.memory_space<vmem>>, vector<1x128xf32>
    %c0_25 = arith.constant 0 : index
    %c0_26 = arith.constant 0 : index
    %47 = vector.load %arg9[%c0_25, %c0_26] : memref<1x128xf32, #tpu.memory_space<vmem>>, vector<1x128xf32>
    %48 = tpu.iota {dimensions = array<i32: 1>} : vector<16x128xi32>
    %c16_i32 = arith.constant 16 : i32
    %49 = vector.broadcast %c16_i32 : i32 to vector<16x128xi32>
    %50 = arith.cmpi slt, %48, %49 : vector<16x128xi32>
    %cst_27 = arith.constant 0.000000e+00 : f32
    %51 = vector.broadcast %cst_27 : f32 to vector<16x128xf32>
    %52 = arith.select %50, %45, %51 : vector<16x128xi1>, vector<16x128xf32>
    %cst_28 = arith.constant dense<0.000000e+00> : vector<16xf32>
    %53 = vector.multi_reduction <add>, %52, %cst_28 [1] : vector<16x128xf32> to vector<16xf32>
    %54 = vector.shape_cast %53 : vector<16xf32> to vector<16x1xf32>
    %cst_29 = arith.constant 6.250000e-02 : f32
    %55 = vector.broadcast %cst_29 : f32 to vector<16x1xf32>
    %56 = arith.mulf %54, %55 : vector<16x1xf32>
    %57 = vector.broadcast %56 : vector<16x1xf32> to vector<16x128xf32>
    %58 = arith.subf %52, %57 : vector<16x128xf32>
    %cst_30 = arith.constant 0.000000e+00 : f32
    %59 = vector.broadcast %cst_30 : f32 to vector<16x128xf32>
    %60 = arith.select %50, %58, %59 : vector<16x128xi1>, vector<16x128xf32>
    %61 = arith.mulf %60, %60 : vector<16x128xf32>
    %cst_31 = arith.constant dense<0.000000e+00> : vector<16xf32>
    %62 = vector.multi_reduction <add>, %61, %cst_31 [1] : vector<16x128xf32> to vector<16xf32>
    %63 = vector.shape_cast %62 : vector<16xf32> to vector<16x1xf32>
    %cst_32 = arith.constant 6.250000e-02 : f32
    %64 = vector.broadcast %cst_32 : f32 to vector<16x1xf32>
    %65 = arith.mulf %63, %64 : vector<16x1xf32>
    %cst_33 = arith.constant 9.99999974E-6 : f32
    %66 = vector.broadcast %cst_33 : f32 to vector<16x1xf32>
    %67 = arith.addf %65, %66 : vector<16x1xf32>
    %68 = math.rsqrt %67 : vector<16x1xf32>
    %69 = vector.broadcast %68 : vector<16x1xf32> to vector<16x128xf32>
    %70 = arith.mulf %60, %69 : vector<16x128xf32>
    %71 = vector.broadcast %46 : vector<1x128xf32> to vector<16x128xf32>
    %72 = arith.mulf %70, %71 : vector<16x128xf32>
    %73 = vector.broadcast %47 : vector<1x128xf32> to vector<16x128xf32>
    %74 = arith.addf %72, %73 : vector<16x128xf32>
    %75 = arith.truncf %74 : vector<16x128xf32> to vector<16x128xbf16>
    %c0_34 = arith.constant 0 : index
    %c0_35 = arith.constant 0 : index
    %76 = vector.load %arg10[%c0_34, %c0_35] : memref<128x128xbf16, #tpu.memory_space<vmem>>, vector<128x128xbf16>
    %cst_36 = arith.constant dense<0.000000e+00> : vector<16x128xf32>
    %77 = tpu.matmul %75, %76, %cst_36 {dimension_numbers = #tpu.dot_dimension_numbers<[1], [0], [0], [1], [0, 0, 1, 1], [], []>} : vector<16x128xbf16>, vector<128x128xbf16>, vector<16x128xf32> -> vector<16x128xf32>
    %c0_37 = arith.constant 0 : index
    %c0_38 = arith.constant 0 : index
    %78 = vector.load %arg11[%c0_37, %c0_38] : memref<1x128xf32, #tpu.memory_space<vmem>>, vector<1x128xf32>
    %79 = vector.broadcast %78 : vector<1x128xf32> to vector<16x128xf32>
    %80 = arith.addf %77, %79 : vector<16x128xf32>
    %c0_39 = arith.constant 0 : index
    %c0_40 = arith.constant 0 : index
    %81 = vector.load %arg12[%c0_39, %c0_40] : memref<16x128xf32, #tpu.memory_space<vmem>>, vector<16x128xf32>
    tpu.vector_store %arg12[%c0_39, %c0_40], %80 {strides = array<i32>} : memref<16x128xf32, #tpu.memory_space<vmem>>, vector<16x128xf32>,
    return
  }
  func.func @transform_0(%arg0: i32) -> (i32, i32) {
    %c0_i32 = arith.constant 0 : i32
    %c0_i32_0 = arith.constant 0 : i32
    return %arg0, %c0_i32 : i32, i32
  }
  func.func @transform_1(%arg0: i32) -> (i32, i32) {
    %c0_i32 = arith.constant 0 : i32
    %c0_i32_0 = arith.constant 0 : i32
    %c0_i32_1 = arith.constant 0 : i32
    return %c0_i32, %c0_i32_0 : i32, i32
  }
  func.func @transform_2(%arg0: i32) -> (i32, i32) {
    %c0_i32 = arith.constant 0 : i32
    %c0_i32_0 = arith.constant 0 : i32
    %c0_i32_1 = arith.constant 0 : i32
    return %c0_i32, %c0_i32_0 : i32, i32
  }
  func.func @transform_3(%arg0: i32) -> (i32, i32) {
    %c0_i32 = arith.constant 0 : i32
    %c0_i32_0 = arith.constant 0 : i32
    %c0_i32_1 = arith.constant 0 : i32
    return %c0_i32, %c0_i32_0 : i32, i32
  }
  func.func @transform_4(%arg0: i32) -> (i32, i32) {
    %c0_i32 = arith.constant 0 : i32
    %c0_i32_0 = arith.constant 0 : i32
    %c0_i32_1 = arith.constant 0 : i32
    return %c0_i32, %c0_i32_0 : i32, i32
  }
  func.func @transform_5(%arg0: i32) -> (i32, i32) {
    %c0_i32 = arith.constant 0 : i32
    %c0_i32_0 = arith.constant 0 : i32
    %c0_i32_1 = arith.constant 0 : i32
    return %c0_i32, %c0_i32_0 : i32, i32
  }
  func.func @transform_6(%arg0: i32) -> (i32, i32) {
    %c0_i32 = arith.constant 0 : i32
    %c0_i32_0 = arith.constant 0 : i32
    %c0_i32_1 = arith.constant 0 : i32
    return %c0_i32, %c0_i32_0 : i32, i32
  }
  func.func @transform_7(%arg0: i32) -> (i32, i32) {
    %c0_i32 = arith.constant 0 : i32
    %c0_i32_0 = arith.constant 0 : i32
    %c0_i32_1 = arith.constant 0 : i32
    return %c0_i32, %c0_i32_0 : i32, i32
  }
  func.func @transform_8(%arg0: i32) -> (i32, i32) {
    %c0_i32 = arith.constant 0 : i32
    %c0_i32_0 = arith.constant 0 : i32
    %c0_i32_1 = arith.constant 0 : i32
    return %c0_i32, %c0_i32_0 : i32, i32
  }
  func.func @transform_9(%arg0: i32) -> (i32, i32) {
    %c0_i32 = arith.constant 0 : i32
    %c0_i32_0 = arith.constant 0 : i32
    %c0_i32_1 = arith.constant 0 : i32
    return %c0_i32, %c0_i32_0 : i32, i32
  }
  func.func @transform_10(%arg0: i32) -> (i32, i32) {
    %c0_i32 = arith.constant 0 : i32
    %c0_i32_0 = arith.constant 0 : i32
    %c0_i32_1 = arith.constant 0 : i32
    return %c0_i32, %c0_i32_0 : i32, i32
  }
  func.func @transform_11(%arg0: i32) -> (i32, i32) {
    %c0_i32 = arith.constant 0 : i32
    %c0_i32_0 = arith.constant 0 : i32
    return %arg0, %c0_i32 : i32, i32
  }
}

</mosaic_0001>

<bundles_post_ra>
// kernel: tpu_custom_call.1
= control target key start
LH: loop header
LB: loop body
LE: loop exit
PB: predicated region body
PF: predicated region fallthrough
CT: control target
= control target key end

     0   :  { %16 = vsyncpa [#allocation3], 0  ;;  %s912_s0 = inlined_call_operand.hbm [shape: f32[16,32], index: 0, kind: input, shape index: {}]   ;;  %s913_s1 = inlined_call_operand.hbm [shape: bf16[32,128], index: 1, kind: input, shape index: {}]   ;;  %s914_s2 = inlined_call_operand.vmem [shape: f32[1,128], index: 2, kind: input, shape index: {}]   ;;  %s915_s3 = inlined_call_operand.vmem [shape: f32[1,128], index: 3, kind: input, shape index: {}]   ;;  %s916_s4 = inlined_call_operand.vmem [shape: f32[1,128], index: 4, kind: input, shape index: {}]   ;;  %s917_s5 = inlined_call_operand.hbm [shape: bf16[128,128], index: 5, kind: input, shape index: {}]   ;;  %s918_s6 = inlined_call_operand.vmem [shape: f32[1,128], index: 6, kind: input, shape index: {}]   ;;  %s919_s7 = inlined_call_operand.vmem [shape: f32[1,128], index: 7, kind: input, shape index: {}]   ;;  %s920_s8 = inlined_call_operand.vmem [shape: f32[1,128], index: 8, kind: input, shape index: {}]   ;;  %s921_s9 = inlined_call_operand.hbm [shape: bf16[128,128], index: 9, kind: input, shape index: {}]   ;;  %s922_s10 = inlined_call_operand.vmem [shape: f32[1,128], index: 10, kind: input, shape index: {}]   ;;  %s923_s11 = inlined_call_operand.hbm [shape: f32[16,128], index: 11, kind: output, shape index: {}]  }
   0x1   :  { %17 = vsyncpa [#allocation6], 0 }
   0x2   :  { %18 = vsyncpa [#allocation9], 0 }
   0x3   :  { %19 = vsyncpa [#allocation4], 0  ;;  %s749_s17 = smov [#allocation5]  }
   0x4   :  { %s37_s18 = sshll.u32 %s749_s17, 4  ;;  %s38_s18 = int_to_ptr.vmem [resolvable:$true] %s37_s18 }
   0x5   :  { %s649_s19 = scalar_lea.vmem %s38_s18, 256  ;;  %p654_p1 = scmp.lt.s32.totalorder %s38_s18, %s38_s18 }
   0x6   :  { %p650_p0 = scmp.ne.s32.totalorder %s38_s18, %s649_s19  ;;  %p655_p2 = scmp.lt.s32.totalorder %s649_s19, %s649_s19 }
   0x8   :  { %p656_p3 = por %p655_p2, %p654_p1 }
   0xa   :  { %p657_p4 = pnand %p656_p3, %p650_p0 }
   0xc   :  { %660 = shalt.err (!%p657_p4)
}
   0xd   :  { %s750_s20 = smov 64   ;;  %s751_s21 = smov 4  }
   0xe   :  { %43 = dma.hbm_to_vmem [thread:$0]  %s913_s1, 256, %s38_s18, [#allocation6], %s750_s20, %s750_s20, %s751_s21  }
   0xf   :  { %s752_s24 = smov [#allocation2]  }
  0x10   :  { %s25_s25 = sshll.u32 %s752_s24, 4  ;;  %s26_s25 = int_to_ptr.vmem [resolvable:$true] %s25_s25 }
  0x11   :  { %s669_s26 = scalar_lea.vmem %s26_s25, 256  ;;  %p674_p6 = scmp.lt.s32.totalorder %s26_s25, %s26_s25 }
  0x12   :  { %p670_p5 = scmp.ne.s32.totalorder %s26_s25, %s669_s26  ;;  %p675_p7 = scmp.lt.s32.totalorder %s669_s26, %s669_s26 }
  0x14   :  { %p676_p8 = por %p675_p7, %p674_p6 }
  0x16   :  { %p677_p9 = pnand %p676_p8, %p670_p5 }
  0x18   :  { %680 = shalt.err (!%p677_p9)
}
  0x19   :  { %s753_s27 = smov 128   ;;  %s754_s28 = smov 8  }
  0x1a   :  { %31 = dma.hbm_to_vmem [thread:$0]  %s912_s0, 256, %s26_s25, [#allocation3], %s753_s27, %s753_s27, %s754_s28  }
  0x1b   :  { %s755_s1 = smov [#allocation7]   ;;  %s756_s13 = smov [#allocation8]  }
  0x1c   :  { %s55_s12 = sshll.u32 %s755_s1, 4  ;;  %s73_s14 = sshll.u32 %s756_s13, 4  ;;  %s56_s12 = int_to_ptr.vmem [resolvable:$true] %s55_s12  ;;  %s74_s14 = int_to_ptr.vmem [resolvable:$true] %s73_s14 }
  0x1d   :  { %s689_s15 = scalar_lea.vmem %s56_s12, 1024  ;;  %p694_p11 = scmp.lt.s32.totalorder %s56_s12, %s56_s12 }
  0x1e   :  { %p690_p10 = scmp.ne.s32.totalorder %s56_s12, %s689_s15  ;;  %p695_p12 = scmp.lt.s32.totalorder %s689_s15, %s689_s15 }
  0x20   :  { %p696_p13 = por %p695_p12, %p694_p11 }
  0x22   :  { %p697_p0 = pnand %p696_p13, %p690_p10 }
  0x24   :  { %700 = shalt.err (!%p697_p0)
}
  0x25   :  { %61 = dma.hbm_to_vmem [thread:$0]  %s917_s5, 1024, %s56_s12, [#allocation6], %s750_s20, %s750_s20, %s751_s21  }
  0x26   :  { %s709_s0 = scalar_lea.vmem %s74_s14, 1024  ;;  %p714_p2 = scmp.lt.s32.totalorder %s74_s14, %s74_s14 }
  0x27   :  { %p710_p1 = scmp.ne.s32.totalorder %s74_s14, %s709_s0  ;;  %p715_p3 = scmp.lt.s32.totalorder %s709_s0, %s709_s0 }
  0x29   :  { %p716_p4 = por %p715_p3, %p714_p2 }
  0x2b   :  { %p717_p5 = pnand %p716_p4, %p710_p1 }
  0x2d   :  { %720 = shalt.err (!%p717_p5)
}
  0x2e   :  { %79 = dma.hbm_to_vmem [thread:$0]  %s921_s9, 1024, %s74_s14, [#allocation9], %s750_s20, %s750_s20, %s751_s21  }
  0x2f   :  { %741 = dma.done.wait [#allocation3], 256  }
  0x30   :  { %742 = vsyncadd [#allocation3], 4294967040 }
  0x31   :  { %743 = dma.done.wait [#allocation6], 1280  }
  0x32   :  { %744 = vsyncadd [#allocation6], 4294966016 }
  0x33   :  { %745 = dma.done.wait [#allocation9], 1024  }
  0x34   :  { %746 = vsyncadd [#allocation9], 4294966272  ;;  %v757_v0 = vmov 0.0   ;;  %vm758_vm0 = vmmov 0   ;;  %v615_v1 = vld [vmem:[#allocation5 + $0x8] sm:$0xff]   ;;  %v616_v2 = vld [vmem:[#allocation5] sm:$0xff]   ;;  %v170_v6 = vlaneseq }
  0x35   :  { %556 = vmatprep.subr.bf16.mxu0 %v757_v0  ;;  %560 = vmatprep.mubr.msk.bf16.mxu0 %vm758_vm0, %v757_v0  ;;  %v95_v3 = vld [vmem:[#allocation2] sm:$0xff]  ;;  %v96_v4 = vld [vmem:[#allocation2 + $0x8] sm:$0xff]  ;;  %vm121_vm1 = vcmask 261120   ;;  %v617_v19 = vld [vmem:[#allocation7 + $0x38] sm:$0xff]  }
  0x36   :  { %564 = vmatprep.subr.bf16.mxu1 %v757_v0  ;;  %580 = vmatprep.mubr.msk.bf16.mxu1 %vm758_vm0, %v757_v0  ;;  %v97_v5 = vpack.c.bf16 %v96_v4, %v95_v3  ;;  %v509_v7 = vld [vmem:[%s914_s2] ss:$0 sm:$0xff]  ;;  %v854_v8 = vand.u32 127, %v170_v6  ;;  %v618_v30 = vld [vmem:[#allocation7 + $0x30] sm:$0xff]   ;;  %v619_v31 = vld [vmem:[#allocation7 + $0x28] sm:$0xff]  }
  0x37   :  { %557 = vmatpush3.bf16.msra.mxu0 %v615_v1  ;;  %565 = vmatpush3.bf16.msra.mxu1 %v617_v19  ;;  %v620_v32 = vld [vmem:[#allocation7 + $0x20] sm:$0xff]   ;;  %v621_v33 = vld [vmem:[#allocation7 + $0x18] sm:$0xff]   ;;  %v622_v34 = vld [vmem:[#allocation7 + $0x10] sm:$0xff]  }
  0x38   :  { %558 = vmatprep.subr.bf16.mxu0 %v757_v0  ;;  %vm172_vm2 = vcmp.lt.s32.totalorder %v854_v8, 32  ;;  %566 = vmatprep.subr.bf16.mxu1 %v757_v0  ;;  %v623_v35 = vld [vmem:[#allocation7 + $0x8] sm:$0xff]   ;;  %v624_v36 = vld [vmem:[#allocation7] sm:$0xff]   ;;  %vm332_vm3 = vcmp.lt.s32.totalorder %v854_v8, 16 }
  0x39   :  { %v513_v45 = vld [vmem:[%s915_s3] ss:$0 sm:$0xff]  ;;  %v631_v8 = vld [vmem:[#allocation8 + $0x8] sm:$0xff]  }
  0x3a   :  { %v514_v49 = vld [vmem:[%s916_s4] ss:$0 sm:$0xff] }
  0x3b   :  { %559 = vmatpush3.bf16.msra.mxu0 %v616_v2  ;;  %567 = vmatpush3.bf16.msra.mxu1 %v618_v30  ;;  %v515_v54 = vld [vmem:[%s918_s6] ss:$0 sm:$0xff]  ;;  %v625_v2 = vld [vmem:[#allocation8 + $0x38] sm:$0xff]  }
  0x3c   :  { %584 = vmatprep.subr.bf16.mxu0 %v757_v0  ;;  %568 = vmatprep.subr.bf16.mxu1 %v757_v0  ;;  %v632_v19 = vld [vmem:[#allocation8] sm:$0xff]  }
  0x3e   :  { %561 = vmatmul.mubr.msk.bf16.vlgmr.msra.gmra.mxu0 %vm121_vm1, %v97_v5 }
  0x3f   :  { %600 = vmatprep.mubr.msk.bf16.mxu0 %vm758_vm0, %v757_v0  ;;  %569 = vmatpush3.bf16.msra.mxu1 %v619_v31 }
  0x40   :  { %570 = vmatprep.subr.bf16.mxu1 %v757_v0  ;;  %585 = vmatpush3.bf16.msra.mxu0 %v625_v2 }
  0x41   :  { %586 = vmatprep.subr.bf16.mxu0 %v757_v0 }
  0x43   :  { %571 = vmatpush3.bf16.msra.mxu1 %v620_v32 }
  0x44   :  { %572 = vmatprep.subr.bf16.mxu1 %v757_v0 }
  0x47   :  { %573 = vmatpush3.bf16.msra.mxu1 %v621_v33 }
  0x48   :  { %574 = vmatprep.subr.bf16.mxu1 %v757_v0 }
  0x4b   :  { %575 = vmatpush3.bf16.msra.mxu1 %v622_v34 }
  0x4c   :  { %576 = vmatprep.subr.bf16.mxu1 %v757_v0 }
  0x4f   :  { %577 = vmatpush3.bf16.msra.mxu1 %v623_v35 }
  0x50   :  { %578 = vmatprep.subr.bf16.mxu1 %v757_v0 }
  0x53   :  { %579 = vmatpush3.bf16.msra.mxu1 %v624_v36  ;;  %v526_v36 = vld [vmem:[%s922_s10] ss:$0 sm:$0xff] }
  0xfe   :  { %v159_v9 = vpop.f32.mrf.mxu0 }
  0xff   :  { %v160_v10 = vadd.f32 %v509_v7, %v159_v9 }
 0x100   :  { %v562_v11 = vpop.f32.mrf.mxu0 }
 0x101   :  { %v166_v12 = vmax.f32 %v160_v10, 0.0 }
 0x102   :  { %v162_v13 = vpop.f32.mrf.mxu0 }
 0x103   :  { %v163_v14 = vadd.f32 %v509_v7, %v162_v13  ;;  %v173_v15 = vsel %vm172_vm2, %v166_v12, 0.0 }
 0x104   :  { %175 = vadd.xlane.f32.xlu0 %v173_v15  ;;  %v563_v16 = vpop.f32.mrf.mxu0 }
 0x105   :  { %v167_v17 = vmax.f32 %v163_v14, 0.0  ;;  %v626_v14 = vld [vmem:[#allocation8 + $0x30] sm:$0xff]   ;;  %v628_v16 = vld [vmem:[#allocation8 + $0x20] sm:$0xff]  }
 0x106   :  { %587 = vmatpush3.bf16.msra.mxu0 %v626_v14 }
 0x107   :  { %v174_v18 = vsel %vm172_vm2, %v167_v17, 0.0  ;;  %588 = vmatprep.subr.bf16.mxu0 %v757_v0  ;;  %v629_v17 = vld [vmem:[#allocation8 + $0x18] sm:$0xff]  }
 0x108   :  { %177 = vadd.xlane.f32.xlu0 %v174_v18 }
 0x18d   :  { %v176_v20 = vpop.xlane.xlu0 %175 }
 0x18e   :  { %v179_v21 = vmul.f32 0.03125, %v176_v20 }
 0x190   :  { %v181_v22 = vsub.f32 %v173_v15, %v179_v21  ;;  %v627_v15 = vld [vmem:[#allocation8 + $0x28] sm:$0xff]  }
 0x191   :  { %v178_v23 = vpop.xlane.xlu0 %177  ;;  %589 = vmatpush3.bf16.msra.mxu0 %v627_v15 }
 0x192   :  { %v180_v24 = vmul.f32 0.03125, %v178_v23  ;;  %v183_v25 = vsel %vm172_vm2, %v181_v22, 0.0  ;;  %590 = vmatprep.subr.bf16.mxu0 %v757_v0 }
 0x193   :  { %v185_v26 = vmul.f32 %v183_v25, %v183_v25 }
 0x194   :  { %v182_v27 = vsub.f32 %v174_v18, %v180_v24  ;;  %v630_v18 = vld [vmem:[#allocation8 + $0x10] sm:$0xff]  }
 0x195   :  { %187 = vadd.xlane.f32.xlu1 %v185_v26  ;;  %591 = vmatpush3.bf16.msra.mxu0 %v628_v16 }
 0x196   :  { %v184_v28 = vsel %vm172_vm2, %v182_v27, 0.0  ;;  %592 = vmatprep.subr.bf16.mxu0 %v757_v0 }
 0x197   :  { %v186_v29 = vmul.f32 %v184_v28, %v184_v28 }
 0x199   :  { %189 = vadd.xlane.f32.xlu1 %v186_v29  ;;  %593 = vmatpush3.bf16.msra.mxu0 %v629_v17 }
 0x19a   :  { %594 = vmatprep.subr.bf16.mxu0 %v757_v0 }
 0x19d   :  { %595 = vmatpush3.bf16.msra.mxu0 %v630_v18 }
 0x19e   :  { %596 = vmatprep.subr.bf16.mxu0 %v757_v0 }
 0x1a1   :  { %597 = vmatpush3.bf16.msra.mxu0 %v631_v8 }
 0x1a2   :  { %598 = vmatprep.subr.bf16.mxu0 %v757_v0  ;;  %v525_v0 = vld [vmem:[%s920_s8] ss:$0 sm:$0xff] }
 0x1a5   :  { %599 = vmatpush3.bf16.msra.mxu0 %v632_v19 }
 0x21e   :  { %v188_v37 = vpop.xlane.xlu1 %187 }
 0x21f   :  { %v191_v38 = vmul.f32 0.03125, %v188_v37 }
 0x221   :  { %v193_v39 = vadd.f32 1e-05, %v191_v38 }
 0x222   :  { %v190_v40 = vpop.xlane.xlu1 %189 }
 0x223   :  { %633 = vrsqrt.f32 %v193_v39  ;;  %v192_v41 = vmul.f32 0.03125, %v190_v40 }
 0x225   :  { %v194_v42 = vadd.f32 1e-05, %v192_v41 }
 0x227   :  { %635 = vrsqrt.f32 %v194_v42 }
 0x230   :  { %v634_v43 = vpop.eup %633 }
 0x231   :  { %v197_v44 = vmul.f32 %v634_v43, %v183_v25 }
 0x233   :  { %v205_v48 = vmul.f32 %v513_v45, %v197_v44 }
 0x234   :  { %v636_v46 = vpop.eup %635 }
 0x235   :  { %v198_v47 = vmul.f32 %v636_v46, %v184_v28  ;;  %v213_v51 = vadd.f32 %v514_v49, %v205_v48  ;;  %v524_v28 = vld [vmem:[%s919_s7] ss:$0 sm:$0xff]  ;;  %s759_s7 = smov [#allocation10]  }
 0x236   :  { %s495_s30 = sshll.u32 %s759_s7, 4  ;;  %s496_s30 = int_to_ptr.vmem [resolvable:$true] %s495_s30 }
 0x237   :  { %v206_v50 = vmul.f32 %v513_v45, %v198_v47  ;;  %s721_s8 = scalar_lea.vmem %s496_s30, 256  ;;  %p726_p7 = scmp.lt.s32.totalorder %s496_s30, %s496_s30 }
 0x238   :  { %p722_p6 = scmp.ne.s32.totalorder %s496_s30, %s721_s8  ;;  %p727_p8 = scmp.lt.s32.totalorder %s721_s8, %s721_s8 }
 0x239   :  { %v214_v52 = vadd.f32 %v514_v49, %v206_v50 }
 0x23a   :  { %p728_p9 = por %p727_p8, %p726_p7 }
 0x23b   :  { %v215_v53 = vpack.c.bf16 %v214_v52, %v213_v51 }
 0x23c   :  { %p729_p10 = pnand %p728_p9, %p722_p6 }
 0x23d   :  { %581 = vmatmul.mubr.bf16.vlgmr.msra.gmra.mxu1 %v215_v53 }
 0x2fd   :  { %v321_v55 = vpop.f32.mrf.mxu1 }
 0x2fe   :  { %v322_v56 = vadd.f32 %v515_v54, %v321_v55 }
 0x2ff   :  { %v582_v57 = vpop.f32.mrf.mxu1 }
 0x300   :  { %v328_v58 = vmax.f32 %v322_v56, 0.0 }
 0x301   :  { %v324_v59 = vpop.f32.mrf.mxu1 }
 0x302   :  { %v325_v60 = vadd.f32 %v515_v54, %v324_v59  ;;  %v333_v61 = vsel %vm332_vm3, %v328_v58, 0.0 }
 0x303   :  { %335 = vadd.xlane.f32.xlu0 %v333_v61  ;;  %v583_v62 = vpop.f32.mrf.mxu1 }
 0x304   :  { %v329_v63 = vmax.f32 %v325_v60, 0.0 }
 0x306   :  { %v334_v1 = vsel %vm332_vm3, %v329_v63, 0.0 }
 0x307   :  { %337 = vadd.xlane.f32.xlu1 %v334_v1 }
 0x38c   :  { %v336_v3 = vpop.xlane.xlu0 %335 }
 0x38d   :  { %v339_v4 = vmul.f32 0.0625, %v336_v3 }
 0x38f   :  { %v341_v5 = vsub.f32 %v333_v61, %v339_v4 }
 0x390   :  { %v338_v6 = vpop.xlane.xlu1 %337 }
 0x391   :  { %v340_v7 = vmul.f32 0.0625, %v338_v6  ;;  %v343_v9 = vsel %vm332_vm3, %v341_v5, 0.0 }
 0x392   :  { %v345_v10 = vmul.f32 %v343_v9, %v343_v9 }
 0x393   :  { %v342_v11 = vsub.f32 %v334_v1, %v340_v7 }
 0x394   :  { %347 = vadd.xlane.f32.xlu0 %v345_v10 }
 0x395   :  { %v344_v12 = vsel %vm332_vm3, %v342_v11, 0.0 }
 0x396   :  { %v346_v13 = vmul.f32 %v344_v12, %v344_v12 }
 0x398   :  { %349 = vadd.xlane.f32.xlu1 %v346_v13 }
 0x41d   :  { %v348_v20 = vpop.xlane.xlu0 %347 }
 0x41e   :  { %v351_v21 = vmul.f32 0.0625, %v348_v20 }
 0x420   :  { %v353_v22 = vadd.f32 1e-05, %v351_v21 }
 0x421   :  { %v350_v23 = vpop.xlane.xlu1 %349 }
 0x422   :  { %637 = vrsqrt.f32 %v353_v22  ;;  %v352_v24 = vmul.f32 0.0625, %v350_v23 }
 0x424   :  { %v354_v25 = vadd.f32 1e-05, %v352_v24 }
 0x426   :  { %639 = vrsqrt.f32 %v354_v25 }
 0x42f   :  { %v638_v26 = vpop.eup %637 }
 0x430   :  { %v357_v27 = vmul.f32 %v638_v26, %v343_v9 }
 0x432   :  { %v365_v31 = vmul.f32 %v524_v28, %v357_v27 }
 0x433   :  { %v640_v29 = vpop.eup %639 }
 0x434   :  { %v358_v30 = vmul.f32 %v640_v29, %v344_v12  ;;  %v373_v33 = vadd.f32 %v525_v0, %v365_v31 }
 0x436   :  { %v366_v32 = vmul.f32 %v524_v28, %v358_v30 }
 0x438   :  { %v374_v34 = vadd.f32 %v525_v0, %v366_v32 }
 0x43a   :  { %v375_v35 = vpack.c.bf16 %v374_v34, %v373_v33 }
 0x43c   :  { %601 = vmatmul.mubr.bf16.vlgmr.msra.gmra.mxu0 %v375_v35 }
 0x4fc   :  { %v481_v37 = vpop.f32.mrf.mxu0 }
 0x4fd   :  { %v482_v38 = vadd.f32 %v526_v36, %v481_v37 }
 0x4fe   :  { %v602_v39 = vpop.f32.mrf.mxu0 }
 0x4ff   :  { %488 = vst [vmem:[#allocation10] sm:$0xff] %v482_v38 }
 0x500   :  { %v484_v40 = vpop.f32.mrf.mxu0 }
 0x501   :  { %v485_v41 = vadd.f32 %v526_v36, %v484_v40 }
 0x502   :  { %v603_v42 = vpop.f32.mrf.mxu0 }
 0x503   :  { %489 = vst [vmem:[#allocation10 + $0x8] sm:$0xff] %v485_v41 }
 0x504   :  { %732 = shalt.err (!%p729_p10)
}
 0x505   :  { %501 = dma.vmem_to_hbm [thread:$0]  %s496_s30, 256, %s923_s11, [#allocation4], %s753_s27, %s753_s27, %s754_s28  }
 0x506   :  { %747 = dma.done.wait [#allocation4], 256  }
 0x507   :  { %748 = vsyncadd [#allocation4], 4294967040 }
 0x508   :  { %505 = vsyncpa [#allocation3], 1 }
 0x509   :  { %506 = vsyncpa [#allocation6], 1 }
 0x50a   :  { %507 = vsyncpa [#allocation9], 1 }
 0x50b   :  { %508 = vsyncpa [#allocation4], 1 }

</bundles_post_ra>
